<compile_context>
chip_gen: v6e
topology: v6e:2x2x1
jax: 0.10.0
libtpu: 0.0.40
codegen_flags: <defaults>
</compile_context>

<pallas_src>
import functools

import jax
import jax.numpy as jnp
from jax.experimental import pallas as pl
from jax.experimental.pallas import tpu as pltpu


def ddpg_critic_kernel(s_ref, a_ref, w1s_ref, w1a_ref, b1_ref, w2_ref, b2_ref,
                       w3_ref, b3_ref, out_ref):
    # fc1: (TB, Ds) @ (Ds, 128) + (TB, Da) @ (Da, 128) + b1, relu
    h1 = (jnp.dot(s_ref[...], w1s_ref[...], preferred_element_type=jnp.float32)
          + jnp.dot(a_ref[...], w1a_ref[...], preferred_element_type=jnp.float32)
          + b1_ref[...])
    h1 = jnp.maximum(h1, 0.0)
    # fc2: (TB, 128) @ (128, 128) + b2, relu  (f32 accumulation)
    h2 = jnp.dot(h1.astype(w2_ref.dtype), w2_ref[...],
                 preferred_element_type=jnp.float32) + b2_ref[...]
    h2 = jnp.maximum(h2, 0.0)
    # critic_output: 128 -> 1 as VPU multiply + lane reduce; b3 is an SMEM scalar.
    q = jnp.sum(h2 * w3_ref[...], axis=-1, keepdims=True) + b3_ref[0, 0]
    out_ref[...] = q


@functools.partial(jax.jit, static_argnames=("block_b", "use_bf16"))
def ddpg_critic_forward(state, action, params, *, block_b=4096, use_bf16=False):
    """state: (B, state_dim) f32, action: (B, action_dim) f32 -> (B, 1) f32."""
    w1, b1, w2, b2, w3_row, b3 = params
    B, Ds = state.shape
    Da = action.shape[1]
    H1 = w1.shape[1]
    H2 = w2.shape[1]

    # Split w1 so fc1 consumes state / action directly (no concat in HBM).
    w1s = w1[:Ds]
    w1a = w1[Ds:]

    # Optional bf16 input/weight streaming (halves DMA bytes on v6e/v7x);
    # accumulation stays f32 inside the kernel.
    act_dtype = jnp.bfloat16 if use_bf16 else jnp.float32
    s = state.astype(act_dtype)
    a = action.astype(act_dtype)
    w1s = w1s.astype(act_dtype)
    w1a = w1a.astype(act_dtype)
    w2c = w2.astype(act_dtype)

    # Batch tile: as large as block_b to amortize the ~0.35us per-grid-step
    # overhead, but never larger than ~B/2 (rounded up to a multiple of 8) so
    # there are >=2 tiles for v7x's second TensorCore whenever B > 8.
    half = -(-B // 2)
    TB = max(8, min(block_b, ((half + 7) // 8) * 8))
    num_tiles = pl.cdiv(B, TB)  # ragged last block handled by Pallas (no pad)

    out = pl.pallas_call(
        ddpg_critic_kernel,
        out_shape=jax.ShapeDtypeStruct((B, 1), jnp.float32),
        grid=(num_tiles,),
        in_specs=[
            # activations: one (TB, *) tile per grid step
            pl.BlockSpec((TB, Ds), lambda i: (i, 0)),
            pl.BlockSpec((TB, Da), lambda i: (i, 0)),
            # weights / biases: constant index_map -> resident in VMEM
            pl.BlockSpec((Ds, H1), lambda i: (0, 0)),
            pl.BlockSpec((Da, H1), lambda i: (0, 0)),
            pl.BlockSpec((1, H1), lambda i: (0, 0)),
            pl.BlockSpec((H1, H2), lambda i: (0, 0)),
            pl.BlockSpec((1, H2), lambda i: (0, 0)),
            pl.BlockSpec((1, H2), lambda i: (0, 0)),
            # b3 scalar lives in SMEM
            pl.BlockSpec(memory_space=pltpu.MemorySpace.SMEM),
        ],
        out_specs=pl.BlockSpec((TB, 1), lambda i: (i, 0)),
        compiler_params=pltpu.CompilerParams(
            dimension_semantics=("parallel",)),
    )(s, a, w1s, w1a, b1, w2c, b2, w3_row, b3)

    return out


def init_params(key, state_dim, action_dim, h1=128, h2=128):
    """Mirrors the PyTorch reset_parameters():
    fc1/fc2 weights ~ U(-1/sqrt(fan_in), 1/sqrt(fan_in)) with fan_in =
    weight.size(0) (i.e. out_features, per the reference `hidden_init`),
    output weight ~ U(-3e-3, 3e-3). Biases keep the default nn.Linear init
    U(-1/sqrt(in_features), 1/sqrt(in_features))."""
    ks = jax.random.split(key, 6)
    in1 = state_dim + action_dim

    lim1 = 1.0 / jnp.sqrt(float(h1))   # fan_in per reference = out_features
    lim2 = 1.0 / jnp.sqrt(float(h2))

    # Weights stored as (in_features, out_features) == W.T of PyTorch layout.
    w1 = jax.random.uniform(ks[0], (in1, h1), jnp.float32, -lim1, lim1)
    w2 = jax.random.uniform(ks[1], (h1, h2), jnp.float32, -lim2, lim2)
    # Output weight stored as a (1, h2) row for the in-kernel VPU reduce.
    w3_row = jax.random.uniform(ks[2], (1, h2), jnp.float32, -0.003, 0.003)

    blim1 = 1.0 / jnp.sqrt(float(in1))
    blim2 = 1.0 / jnp.sqrt(float(h1))
    blim3 = 1.0 / jnp.sqrt(float(h2))
    b1 = jax.random.uniform(ks[3], (1, h1), jnp.float32, -blim1, blim1)
    b2 = jax.random.uniform(ks[4], (1, h2), jnp.float32, -blim2, blim2)
    b3 = jax.random.uniform(ks[5], (1, 1), jnp.float32, -blim3, blim3)

    return (w1, b1, w2, b2, w3_row, b3)


if __name__ == "__main__":
    key = jax.random.PRNGKey(0)
    B, state_dim, action_dim = 8, 24, 8

    k_s, k_a, k_p = jax.random.split(key, 3)
    state = jax.random.normal(k_s, (B, state_dim), jnp.float32)
    action = jax.random.normal(k_a, (B, action_dim), jnp.float32)
    params = init_params(k_p, state_dim, action_dim)

    # f32 path (default): strict check against pure-JAX reference.
    q = ddpg_critic_forward(state, action, params)
    jax.block_until_ready(q)

    w1, b1, w2, b2, w3_row, b3 = params
    x = jnp.concatenate([state, action], axis=1)
    h = jnp.maximum(x @ w1 + b1, 0.0)
    h = jnp.maximum(h @ w2 + b2, 0.0)
    q_ref = h @ w3_row.T + b3
    assert q.shape == (B, 1)
    assert jnp.allclose(q, q_ref, atol=1e-5, rtol=1e-5)

    # bf16 streaming path (v6e/v7x optimization): loose tolerance.
    q_bf16 = ddpg_critic_forward(state, action, params, use_bf16=True)
    jax.block_until_ready(q_bf16)
    assert q_bf16.shape == (B, 1)
    assert jnp.allclose(q_bf16, q_ref, atol=5e-2)

    print("KERNEL_OK")
</pallas_src>

<mosaic_0001>
module attributes {stable_mosaic.version = 11 : i64} {
  func.func @ddpg_critic_kernel(%arg0: i32, %arg1: memref<8x24xf32, #tpu.memory_space<vmem>>, %arg2: memref<8x8xf32, #tpu.memory_space<vmem>>, %arg3: memref<24x128xf32, #tpu.memory_space<vmem>>, %arg4: memref<8x128xf32, #tpu.memory_space<vmem>>, %arg5: memref<1x128xf32, #tpu.memory_space<vmem>>, %arg6: memref<128x128xf32, #tpu.memory_space<vmem>>, %arg7: memref<1x128xf32, #tpu.memory_space<vmem>>, %arg8: memref<1x128xf32, #tpu.memory_space<vmem>>, %arg9: memref<1x1xf32, #tpu.memory_space<smem>>, %arg10: memref<8x1xf32, #tpu.memory_space<vmem>>) attributes {dimension_semantics = [#tpu.dimension_semantics<parallel>], iteration_bounds = array<i64: 1>, scalar_prefetch = 0 : i64, scratch_operands = 0 : i64, tpu.core_type = #tpu.core_type<tc>, window_params = [{transform_indices = @transform_0, window_bounds = array<i64: 8, 24>}, {transform_indices = @transform_1, window_bounds = array<i64: 8, 8>}, {pipeline_mode = #tpu.pipeline_mode<synchronous>, transform_indices = @transform_2, window_bounds = array<i64: 24, 128>}, {pipeline_mode = #tpu.pipeline_mode<synchronous>, transform_indices = @transform_3, window_bounds = array<i64: 8, 128>}, {pipeline_mode = #tpu.pipeline_mode<synchronous>, transform_indices = @transform_4, window_bounds = array<i64: 1, 128>}, {pipeline_mode = #tpu.pipeline_mode<synchronous>, transform_indices = @transform_5, window_bounds = array<i64: 128, 128>}, {pipeline_mode = #tpu.pipeline_mode<synchronous>, transform_indices = @transform_6, window_bounds = array<i64: 1, 128>}, {pipeline_mode = #tpu.pipeline_mode<synchronous>, transform_indices = @transform_7, window_bounds = array<i64: 1, 128>}, {transform_indices = @transform_8, window_bounds = array<i64: 1, 1>}, {transform_indices = @transform_9, window_bounds = array<i64: 8, 1>}]} {
    %c0 = arith.constant 0 : index
    %c0_0 = arith.constant 0 : index
    %0 = vector.load %arg1[%c0, %c0_0] : memref<8x24xf32, #tpu.memory_space<vmem>>, vector<8x24xf32>
    %c0_1 = arith.constant 0 : index
    %c0_2 = arith.constant 0 : index
    %1 = vector.load %arg3[%c0_1, %c0_2] : memref<24x128xf32, #tpu.memory_space<vmem>>, vector<24x128xf32>
    %cst = arith.constant dense<0.000000e+00> : vector<8x128xf32>
    %2 = tpu.matmul %0, %1, %cst {dimension_numbers = #tpu.dot_dimension_numbers<[1], [0], [0], [1], [0, 0, 1, 1], [], []>} : vector<8x24xf32>, vector<24x128xf32>, vector<8x128xf32> -> vector<8x128xf32>
    %c0_3 = arith.constant 0 : index
    %c0_4 = arith.constant 0 : index
    %3 = vector.load %arg2[%c0_3, %c0_4] : memref<8x8xf32, #tpu.memory_space<vmem>>, vector<8x8xf32>
    %c0_5 = arith.constant 0 : index
    %c0_6 = arith.constant 0 : index
    %4 = vector.load %arg4[%c0_5, %c0_6] : memref<8x128xf32, #tpu.memory_space<vmem>>, vector<8x128xf32>
    %cst_7 = arith.constant dense<0.000000e+00> : vector<8x128xf32>
    %5 = tpu.matmul %3, %4, %cst_7 {dimension_numbers = #tpu.dot_dimension_numbers<[1], [0], [0], [1], [0, 0, 1, 1], [], []>} : vector<8x8xf32>, vector<8x128xf32>, vector<8x128xf32> -> vector<8x128xf32>
    %6 = arith.addf %2, %5 : vector<8x128xf32>
    %c0_8 = arith.constant 0 : index
    %c0_9 = arith.constant 0 : index
    %7 = vector.load %arg5[%c0_8, %c0_9] : memref<1x128xf32, #tpu.memory_space<vmem>>, vector<1x128xf32>
    %8 = vector.broadcast %7 : vector<1x128xf32> to vector<8x128xf32>
    %9 = arith.addf %6, %8 : vector<8x128xf32>
    %cst_10 = arith.constant 0.000000e+00 : f32
    %10 = vector.broadcast %cst_10 : f32 to vector<8x128xf32>
    %11 = arith.maximumf %9, %10 : vector<8x128xf32>
    %c0_11 = arith.constant 0 : index
    %c0_12 = arith.constant 0 : index
    %12 = vector.load %arg6[%c0_11, %c0_12] : memref<128x128xf32, #tpu.memory_space<vmem>>, vector<128x128xf32>
    %cst_13 = arith.constant dense<0.000000e+00> : vector<8x128xf32>
    %13 = tpu.matmul %11, %12, %cst_13 {dimension_numbers = #tpu.dot_dimension_numbers<[1], [0], [0], [1], [0, 0, 1, 1], [], []>} : vector<8x128xf32>, vector<128x128xf32>, vector<8x128xf32> -> vector<8x128xf32>
    %c0_14 = arith.constant 0 : index
    %c0_15 = arith.constant 0 : index
    %14 = vector.load %arg7[%c0_14, %c0_15] : memref<1x128xf32, #tpu.memory_space<vmem>>, vector<1x128xf32>
    %15 = vector.broadcast %14 : vector<1x128xf32> to vector<8x128xf32>
    %16 = arith.addf %13, %15 : vector<8x128xf32>
    %cst_16 = arith.constant 0.000000e+00 : f32
    %17 = vector.broadcast %cst_16 : f32 to vector<8x128xf32>
    %18 = arith.maximumf %16, %17 : vector<8x128xf32>
    %c0_17 = arith.constant 0 : index
    %c0_18 = arith.constant 0 : index
    %19 = vector.load %arg8[%c0_17, %c0_18] : memref<1x128xf32, #tpu.memory_space<vmem>>, vector<1x128xf32>
    %20 = vector.broadcast %19 : vector<1x128xf32> to vector<8x128xf32>
    %21 = arith.mulf %18, %20 : vector<8x128xf32>
    %cst_19 = arith.constant dense<0.000000e+00> : vector<8xf32>
    %22 = vector.multi_reduction <add>, %21, %cst_19 [1] : vector<8x128xf32> to vector<8xf32>
    %23 = vector.shape_cast %22 : vector<8xf32> to vector<8x1xf32>
    %c0_20 = arith.constant 0 : index
    %c0_21 = arith.constant 0 : index
    %24 = memref.load %arg9[%c0_20, %c0_21] : memref<1x1xf32, #tpu.memory_space<smem>>
    %25 = vector.broadcast %24 : f32 to vector<8x1xf32>
    %26 = arith.addf %23, %25 : vector<8x1xf32>
    %c0_22 = arith.constant 0 : index
    %c0_23 = arith.constant 0 : index
    %27 = vector.load %arg10[%c0_22, %c0_23] : memref<8x1xf32, #tpu.memory_space<vmem>>, vector<8x1xf32>
    tpu.vector_store %arg10[%c0_22, %c0_23], %26 {strides = array<i32>} : memref<8x1xf32, #tpu.memory_space<vmem>>, vector<8x1xf32>,
    return
  }
  func.func @transform_0(%arg0: i32) -> (i32, i32) {
    %c0_i32 = arith.constant 0 : i32
    %c0_i32_0 = arith.constant 0 : i32
    return %arg0, %c0_i32 : i32, i32
  }
  func.func @transform_1(%arg0: i32) -> (i32, i32) {
    %c0_i32 = arith.constant 0 : i32
    %c0_i32_0 = arith.constant 0 : i32
    return %arg0, %c0_i32 : i32, i32
  }
  func.func @transform_2(%arg0: i32) -> (i32, i32) {
    %c0_i32 = arith.constant 0 : i32
    %c0_i32_0 = arith.constant 0 : i32
    %c0_i32_1 = arith.constant 0 : i32
    return %c0_i32, %c0_i32_0 : i32, i32
  }
  func.func @transform_3(%arg0: i32) -> (i32, i32) {
    %c0_i32 = arith.constant 0 : i32
    %c0_i32_0 = arith.constant 0 : i32
    %c0_i32_1 = arith.constant 0 : i32
    return %c0_i32, %c0_i32_0 : i32, i32
  }
  func.func @transform_4(%arg0: i32) -> (i32, i32) {
    %c0_i32 = arith.constant 0 : i32
    %c0_i32_0 = arith.constant 0 : i32
    %c0_i32_1 = arith.constant 0 : i32
    return %c0_i32, %c0_i32_0 : i32, i32
  }
  func.func @transform_5(%arg0: i32) -> (i32, i32) {
    %c0_i32 = arith.constant 0 : i32
    %c0_i32_0 = arith.constant 0 : i32
    %c0_i32_1 = arith.constant 0 : i32
    return %c0_i32, %c0_i32_0 : i32, i32
  }
  func.func @transform_6(%arg0: i32) -> (i32, i32) {
    %c0_i32 = arith.constant 0 : i32
    %c0_i32_0 = arith.constant 0 : i32
    %c0_i32_1 = arith.constant 0 : i32
    return %c0_i32, %c0_i32_0 : i32, i32
  }
  func.func @transform_7(%arg0: i32) -> (i32, i32) {
    %c0_i32 = arith.constant 0 : i32
    %c0_i32_0 = arith.constant 0 : i32
    %c0_i32_1 = arith.constant 0 : i32
    return %c0_i32, %c0_i32_0 : i32, i32
  }
  func.func @transform_8(%arg0: i32) -> (i32, i32) {
    %c0_i32 = arith.constant 0 : i32
    %c0_i32_0 = arith.constant 0 : i32
    %c0_i32_1 = arith.constant 0 : i32
    return %c0_i32, %c0_i32_0 : i32, i32
  }
  func.func @transform_9(%arg0: i32) -> (i32, i32) {
    %c0_i32 = arith.constant 0 : i32
    %c0_i32_0 = arith.constant 0 : i32
    return %arg0, %c0_i32 : i32, i32
  }
}

</mosaic_0001>

<bundles_post_ra>
// kernel: ddpg_critic_forward.1
= control target key start
LH: loop header
LB: loop body
LE: loop exit
PB: predicated region body
PF: predicated region fallthrough
CT: control target
= control target key end

     0   :  { %15 = vsyncpa [#allocation4], 0  ;;  %s428_s30 = smov [#allocation3]   ;;  %s542_s0 = inlined_call_operand.vmem [shape: f32[8,24], index: 0, kind: input, shape index: {}]   ;;  %s543_s1 = inlined_call_operand.vmem [shape: f32[8,8], index: 1, kind: input, shape index: {}]   ;;  %s544_s2 = inlined_call_operand.vmem [shape: f32[24,128], index: 2, kind: input, shape index: {}]   ;;  %s545_s3 = inlined_call_operand.vmem [shape: f32[8,128], index: 3, kind: input, shape index: {}]   ;;  %s546_s4 = inlined_call_operand.vmem [shape: f32[1,128], index: 4, kind: input, shape index: {}]   ;;  %s547_s5 = inlined_call_operand.hbm [shape: f32[128,128], index: 5, kind: input, shape index: {}]   ;;  %s548_s6 = inlined_call_operand.vmem [shape: f32[1,128], index: 6, kind: input, shape index: {}]   ;;  %s549_s7 = inlined_call_operand.vmem [shape: f32[1,128], index: 7, kind: input, shape index: {}]   ;;  %s550_s8 = inlined_call_operand.<no memory space> [shape: f32[1,1], index: 8, kind: input, shape index: {}]   ;;  %s551_s9 = inlined_call_operand.vmem [shape: f32[8,1], index: 9, kind: output, shape index: {}]  }
   0x1   :  { %s31_s10 = sshll.u32 %s428_s30, 4  ;;  %s32_s10 = int_to_ptr.vmem [resolvable:$true] %s31_s10 }
   0x2   :  { %s414_s11 = scalar_lea.vmem %s32_s10, 2048  ;;  %p419_p1 = scmp.lt.s32.totalorder %s32_s10, %s32_s10 }
   0x3   :  { %p415_p0 = scmp.ne.s32.totalorder %s32_s10, %s414_s11  ;;  %p420_p2 = scmp.lt.s32.totalorder %s414_s11, %s414_s11 }
   0x5   :  { %p421_p3 = por %p420_p2, %p419_p1 }
   0x7   :  { %p422_p4 = pnand %p421_p3, %p415_p0 }
   0x9   :  { %425 = shalt.err (!%p422_p4)
}
   0xa   :  { %s429_s12 = smov 128   ;;  %s430_s13 = smov 8  }
   0xb   :  { %37 = dma.hbm_to_vmem [thread:$0]  %s547_s5, 2048, %s32_s10, [#allocation4], %s429_s12, %s429_s12, %s430_s13  }
   0xc   :  { %426 = dma.done.wait [#allocation4], 2048  }
   0xd   :  { %427 = vsyncadd [#allocation4], 4294965248  ;;  %v431_v0 = vmov 0.0   ;;  %vm432_vm0 = vmmov 0   ;;  %vm53_vm1 = vcmask 64512   ;;  %v52_v1 = vld [vmem:[%s545_s3] sm:$0xff]  ;;  %v315_v38 = vstv %s550_s8 }
   0xe   :  { %352 = vmatprep.subr.mxu1 %v431_v0  ;;  %354 = vmatprep.mubr.msk.f32.mxu1 %vm432_vm0, %v431_v0  ;;  %v51_v2 = vld [vmem:[%s543_s1] sm:$0xff]  ;;  %v50_v3 = vld [vmem:[%s544_s2 + $0x10] sm:$0xff]  ;;  %v49_v4 = vld [vmem:[%s544_s2 + $0x8] sm:$0xff]  ;;  %vm127_vm2 = vcmask 195584   ;;  %vm317_vm3 = vcmask 7168  }
   0xf   :  { %366 = vmatprep.subr.mxu0 %v431_v0  ;;  %398 = vmatprep.mubr.msk.f32.mxu0 %vm432_vm0, %v431_v0  ;;  %v225_v5 = vld [vmem:[#allocation3 + $0x78] sm:$0xff]  ;;  %v224_v6 = vld [vmem:[#allocation3 + $0x70] sm:$0xff]  ;;  %v48_v7 = vld [vmem:[%s544_s2] sm:$0xff] }
  0x10   :  { %353 = vmatpush3.msra.mxu1 %v52_v1  ;;  %367 = vmatpush3.msra.mxu0 %v225_v5  ;;  %v47_v8 = vld [vmem:[%s542_s0] sm:$0xff]  ;;  %v223_v9 = vld [vmem:[#allocation3 + $0x68] sm:$0xff]  ;;  %v221_v11 = vld [vmem:[#allocation3 + $0x58] sm:$0xff] }
  0x11   :  { %355 = vmatmul.mubr.msk.f32.vlgmr.msra.gmra.mxu1 %vm53_vm1, %v51_v2  ;;  %357 = vmatprep.subr.mxu1 %v431_v0  ;;  %v222_v10 = vld [vmem:[#allocation3 + $0x60] sm:$0xff]  ;;  %v220_v12 = vld [vmem:[#allocation3 + $0x50] sm:$0xff]  ;;  %v219_v13 = vld [vmem:[#allocation3 + $0x48] sm:$0xff] }
  0x12   :  { %358 = vmatpush3.msra.mxu1 %v50_v3  ;;  %363 = vmatprep.mubr.msk.f32.mxu1 %vm432_vm0, %v431_v0  ;;  %v218_v14 = vld [vmem:[#allocation3 + $0x40] sm:$0xff]  ;;  %v217_v15 = vld [vmem:[#allocation3 + $0x38] sm:$0xff]  ;;  %v216_v16 = vld [vmem:[#allocation3 + $0x30] sm:$0xff] }
  0x13   :  { %359 = vmatprep.subr.mxu1 %v431_v0  ;;  %368 = vmatprep.subr.mxu0 %v431_v0  ;;  %v215_v17 = vld [vmem:[#allocation3 + $0x28] sm:$0xff]  ;;  %v214_v18 = vld [vmem:[#allocation3 + $0x20] sm:$0xff]  ;;  %v213_v19 = vld [vmem:[#allocation3 + $0x18] sm:$0xff] }
  0x14   :  { %360 = vmatpush3.msra.mxu1 %v49_v4  ;;  %369 = vmatpush3.msra.mxu0 %v224_v6  ;;  %v212_v20 = vld [vmem:[#allocation3 + $0x10] sm:$0xff]  ;;  %v211_v21 = vld [vmem:[#allocation3 + $0x8] sm:$0xff]  ;;  %v210_v22 = vld [vmem:[#allocation3] sm:$0xff] }
  0x15   :  { %361 = vmatprep.subr.mxu1 %v431_v0  ;;  %370 = vmatprep.subr.mxu0 %v431_v0  ;;  %v326_v26 = vld [vmem:[%s546_s4] ss:$0 sm:$0xff] }
  0x16   :  { %362 = vmatpush3.msra.mxu1 %v48_v7  ;;  %371 = vmatpush3.msra.mxu0 %v223_v9  ;;  %v327_v31 = vld [vmem:[%s548_s6] ss:$0 sm:$0xff] }
  0x17   :  { %364 = vmatmul.mubr.msk.f32.vlgmr.msra.gmra.mxu1 %vm127_vm2, %v47_v8  ;;  %372 = vmatprep.subr.mxu0 %v431_v0  ;;  %v328_v35 = vld [vmem:[%s549_s7] ss:$0 sm:$0xff] }
  0x18   :  { %373 = vmatpush3.msra.mxu0 %v222_v10 }
  0x19   :  { %374 = vmatprep.subr.mxu0 %v431_v0 }
  0x1a   :  { %375 = vmatpush3.msra.mxu0 %v221_v11 }
  0x1b   :  { %376 = vmatprep.subr.mxu0 %v431_v0 }
  0x1c   :  { %377 = vmatpush3.msra.mxu0 %v220_v12 }
  0x1d   :  { %378 = vmatprep.subr.mxu0 %v431_v0 }
  0x1e   :  { %379 = vmatpush3.msra.mxu0 %v219_v13 }
  0x1f   :  { %380 = vmatprep.subr.mxu0 %v431_v0 }
  0x20   :  { %381 = vmatpush3.msra.mxu0 %v218_v14 }
  0x21   :  { %382 = vmatprep.subr.mxu0 %v431_v0 }
  0x22   :  { %383 = vmatpush3.msra.mxu0 %v217_v15 }
  0x23   :  { %384 = vmatprep.subr.mxu0 %v431_v0 }
  0x24   :  { %385 = vmatpush3.msra.mxu0 %v216_v16 }
  0x25   :  { %386 = vmatprep.subr.mxu0 %v431_v0 }
  0x26   :  { %387 = vmatpush3.msra.mxu0 %v215_v17 }
  0x27   :  { %388 = vmatprep.subr.mxu0 %v431_v0 }
  0x28   :  { %389 = vmatpush3.msra.mxu0 %v214_v18 }
  0x29   :  { %390 = vmatprep.subr.mxu0 %v431_v0 }
  0x2a   :  { %391 = vmatpush3.msra.mxu0 %v213_v19 }
  0x2b   :  { %392 = vmatprep.subr.mxu0 %v431_v0 }
  0x2c   :  { %393 = vmatpush3.msra.mxu0 %v212_v20 }
  0x2d   :  { %394 = vmatprep.subr.mxu0 %v431_v0 }
  0x2e   :  { %395 = vmatpush3.msra.mxu0 %v211_v21 }
  0x2f   :  { %396 = vmatprep.subr.mxu0 %v431_v0 }
  0x30   :  { %397 = vmatpush3.msra.mxu0 %v210_v22 }
  0xd1   :  { %v123_v23 = vpop.f32.mrf.mxu1 }
  0xd3   :  { %v356_v24 = vpop.f32.mrf.mxu1 }
  0xd7   :  { %v197_v25 = vpop.f32.mrf.mxu1 }
  0xd8   :  { %v198_v27 = vadd.f32 %v197_v25, %v123_v23 }
  0xd9   :  { %v365_v28 = vpop.f32.mrf.mxu1 }
  0xda   :  { %v208_v29 = vadd.f32 %v326_v26, %v198_v27 }
  0xdc   :  { %v209_v30 = vmax.f32 %v208_v29, 0.0 }
  0xde   :  { %399 = vmatmul.mubr.f32.vlgmr.msra.gmra.mxu0 %v209_v30 }
 0x19e   :  { %v299_v32 = vpop.f32.mrf.mxu0 }
 0x19f   :  { %v300_v33 = vadd.f32 %v327_v31, %v299_v32 }
 0x1a0   :  { %v400_v34 = vpop.f32.mrf.mxu0 }
 0x1a1   :  { %v303_v36 = vmax.f32 %v300_v33, 0.0 }
 0x1a3   :  { %v311_v37 = vmul.f32 %v328_v35, %v303_v36 }
 0x1a5   :  { %312 = vadd.xlane.f32.xlu0 %v311_v37 }
 0x22e   :  { %v313_v39 = vpop.xlane.xlu0 %312 }
 0x22f   :  { %v316_v40 = vadd.f32 %v315_v38, %v313_v39 }
 0x231   :  { %318 = vst.msk [vmem:[%s551_s9] sm:$0xff] %vm317_vm3, %v316_v40 }
 0x232   :  { %323 = vsyncpa [#allocation4], 1 }

</bundles_post_ra>
